<compile_context>
chip_gen: v7x
topology: tpu7x:2x2x1
jax: 0.10.0
libtpu: 0.0.40
codegen_flags: <defaults>
</compile_context>

<pallas_src>
import jax
import jax.numpy as jnp
from jax.experimental import pallas as pl
from jax.experimental.pallas import tpu as pltpu


def _pixel_mlp_kernel(x_ref, w1_ref, b1_ref, w2_ref, b2_ref, o_ref):
    # x_ref:  (1, Cin, TM)  f32 tile (channels on sublanes, pixels on lanes)
    # w1_ref: (Hid, Cin)    bf16 full
    # b1_ref: (Hid, 1)      f32 full (column bias)
    # w2_ref: (Cout, Hid)   bf16 full
    # b2_ref: (Cout, 1)     f32 full (column bias)
    # o_ref:  (1, Cout, TM) output tile
    x = x_ref[0].astype(jnp.bfloat16)                       # (Cin, TM) bf16
    # Single-pass bf16 MXU, f32 accumulation.
    h = jnp.dot(w1_ref[...], x,
                preferred_element_type=jnp.float32)         # (Hid, TM) f32
    h = jnp.maximum(h + b1_ref[...], 0.0)
    y = jnp.dot(w2_ref[...], h.astype(jnp.bfloat16),
                preferred_element_type=jnp.float32)         # (Cout, TM) f32
    o_ref[0] = (y + b2_ref[...]).astype(o_ref.dtype)


def _pad8(c):
    return -(-c // 8) * 8


def _max_tm_for_vmem(cin, cout, hid, budget_bytes=24 << 20):
    """Largest tm (multiple of 128) whose per-step VMEM footprint fits budget."""
    per_unit = (2 * _pad8(cin) * 4          # double-buffered input blocks
                + 2 * _pad8(cout) * 4       # double-buffered output blocks
                + _pad8(hid) * 4            # f32 h intermediate
                + (_pad8(cin) + _pad8(hid)) * 2   # bf16 copies of x, relu(h)
                ) * 128
    units = max(1, budget_bytes // per_unit)
    return units * 128


def _spatial_tiling(hw, n, tm):
    """Pick (tm_eff, num_spatial) for the lane (spatial) axis.

    Constraints / goals:
      * tm_eff is a multiple of 128, or equals hw (full extent).
      * Prefer an even split of hw (no masked tail tile).
      * Total grid steps >= 2 when possible (v7x megacore sharding).
    """
    if hw % 128 != 0:
        # Lane axis not a multiple of 128: use full extent if it fits,
        # otherwise 128-multiple tiles with a masked tail on the last step.
        if hw <= tm:
            return hw, 1
        tm_eff = max(128, (tm // 128) * 128)
        return tm_eff, pl.cdiv(hw, tm_eff)

    units = hw // 128                       # number of 128-lane groups
    want = max(1, min(tm // 128, units))
    if n == 1 and want >= units and units >= 2:
        # Single image, single tile would mean a 1-step grid: split so both
        # v7x TensorCores get work.
        want = (units + 1) // 2

    # Prefer a divisor of `units` (even split, no tail) as long as it is not
    # more than 2x smaller than the desired tile.
    d = want
    while d > max(1, want // 2) and units % d != 0:
        d -= 1
    if units % d == 0:
        return d * 128, units // d
    # No decent divisor: accept a masked tail tile instead of tiny tiles.
    return want * 128, pl.cdiv(units, want)


def pixel_mlp_segmentation(x_nchw, w1, b1, w2, b2, *, tm=32768, out_dtype=None):
    """Forward pass of PixelMLPSegmentation.

    x_nchw: (N, Cin, H, W) float32
    w1:     (Hid, Cin)     (== conv1.weight[:, :, 0, 0])
    b1:     (Hid,)
    w2:     (Cout, Hid)    (== conv2.weight[:, :, 0, 0])
    b2:     (Cout,)
    returns (N, Cout, H, W) in out_dtype (default: x dtype)
    """
    N, Cin, H, W = x_nchw.shape
    Hid = w1.shape[0]
    Cout = w2.shape[0]
    HW = H * W
    out_dtype = x_nchw.dtype if out_dtype is None else out_dtype

    # Contiguous reshape only (no transpose, no pad): NCHW -> (N, Cin, H*W).
    x_flat = x_nchw.reshape(N, Cin, HW)

    # Weights cast to bf16 once here (tiny), biases stay f32 column vectors.
    w1_b = w1.astype(jnp.bfloat16)
    w2_b = w2.astype(jnp.bfloat16)
    b1_col = b1.astype(jnp.float32).reshape(Hid, 1)
    b2_col = b2.astype(jnp.float32).reshape(Cout, 1)

    # Clamp the requested tile to the VMEM budget, then tile the spatial axis.
    tm = min(max(tm, 128), _max_tm_for_vmem(Cin, Cout, Hid))
    tm_eff, num_spatial = _spatial_tiling(HW, N, tm)

    grid = (N, num_spatial)

    out_flat = pl.pallas_call(
        _pixel_mlp_kernel,
        out_shape=jax.ShapeDtypeStruct((N, Cout, HW), out_dtype),
        grid_spec=pltpu.PrefetchScalarGridSpec(
            num_scalar_prefetch=0,
            grid=grid,
            in_specs=[
                pl.BlockSpec((1, Cin, tm_eff), lambda n, s: (n, 0, s)),
                pl.BlockSpec((Hid, Cin), lambda n, s: (0, 0)),
                pl.BlockSpec((Hid, 1), lambda n, s: (0, 0)),
                pl.BlockSpec((Cout, Hid), lambda n, s: (0, 0)),
                pl.BlockSpec((Cout, 1), lambda n, s: (0, 0)),
            ],
            out_specs=pl.BlockSpec((1, Cout, tm_eff), lambda n, s: (n, 0, s)),
        ),
        compiler_params=pltpu.CompilerParams(
            dimension_semantics=("parallel", "parallel"),
        ),
    )(x_flat, w1_b, b1_col, w2_b, b2_col)

    # Contiguous reshape back: (N, Cout, H*W) -> (N, Cout, H, W).
    return out_flat.reshape(N, Cout, H, W)


def init_params(key, in_channels=3, hidden_dim=32, out_channels=4):
    """Deterministic synthetic parameters (PyTorch conv-weight layout)."""
    k1, k2, k3, k4 = jax.random.split(key, 4)
    # Conv2d(Cin, Hid, 1).weight has shape (Hid, Cin, 1, 1); stored as (Hid, Cin).
    s1 = 1.0 / jnp.sqrt(in_channels)
    w1 = jax.random.uniform(k1, (hidden_dim, in_channels), jnp.float32, -s1, s1)
    b1 = jax.random.uniform(k2, (hidden_dim,), jnp.float32, -s1, s1)
    s2 = 1.0 / jnp.sqrt(hidden_dim)
    w2 = jax.random.uniform(k3, (out_channels, hidden_dim), jnp.float32, -s2, s2)
    b2 = jax.random.uniform(k4, (out_channels,), jnp.float32, -s2, s2)
    return w1, b1, w2, b2


if __name__ == "__main__":
    key = jax.random.PRNGKey(0)
    k_x, k_p = jax.random.split(key)

    N, Cin, H, W = 2, 3, 16, 16
    hidden_dim, Cout = 32, 4

    x = jax.random.normal(k_x, (N, Cin, H, W), jnp.float32)
    w1, b1, w2, b2 = init_params(k_p, Cin, hidden_dim, Cout)

    y = pixel_mlp_segmentation(x, w1, b1, w2, b2)
    y = jax.block_until_ready(y)
    assert y.shape == (N, Cout, H, W), y.shape

    # Pure-JAX f32 reference (same math as the PyTorch module).  The kernel
    # uses single-pass bf16 MXU operands with f32 accumulation, so compare
    # with a bf16-matmul-class tolerance.
    x_flat = x.reshape(N, Cin, H * W)
    h_ref = jnp.maximum(jnp.einsum("hc,ncp->nhp", w1, x_flat) + b1[:, None], 0.0)
    ref = jnp.einsum("oh,nhp->nop", w2, h_ref) + b2[:, None]
    ref = ref.reshape(N, Cout, H, W)
    assert jnp.allclose(y, ref, atol=2e-2, rtol=2e-2), float(
        jnp.max(jnp.abs(y - ref)))

    print("KERNEL_OK")
</pallas_src>

<mosaic_0001>
module attributes {stable_mosaic.version = 11 : i64} {
  func.func @_pixel_mlp_kernel(%arg0: i32, %arg1: i32, %arg2: memref<1x3x256xf32, #tpu.memory_space<vmem>>, %arg3: memref<32x3xbf16, #tpu.memory_space<vmem>>, %arg4: memref<32x1xf32, #tpu.memory_space<vmem>>, %arg5: memref<4x32xbf16, #tpu.memory_space<vmem>>, %arg6: memref<4x1xf32, #tpu.memory_space<vmem>>, %arg7: memref<1x4x256xf32, #tpu.memory_space<vmem>>) attributes {dimension_semantics = [#tpu.dimension_semantics<parallel>, #tpu.dimension_semantics<parallel>], iteration_bounds = array<i64: 2, 1>, scalar_prefetch = 0 : i64, scratch_operands = 0 : i64, tpu.core_type = #tpu.core_type<tc>, window_params = [{transform_indices = @transform_0, window_bounds = array<i64: 1, 3, 256>}, {pipeline_mode = #tpu.pipeline_mode<synchronous>, transform_indices = @transform_1, window_bounds = array<i64: 32, 3>}, {pipeline_mode = #tpu.pipeline_mode<synchronous>, transform_indices = @transform_2, window_bounds = array<i64: 32, 1>}, {pipeline_mode = #tpu.pipeline_mode<synchronous>, transform_indices = @transform_3, window_bounds = array<i64: 4, 32>}, {pipeline_mode = #tpu.pipeline_mode<synchronous>, transform_indices = @transform_4, window_bounds = array<i64: 4, 1>}, {transform_indices = @transform_5, window_bounds = array<i64: 1, 4, 256>}]} {
    %c0 = arith.constant 0 : index
    %c0_0 = arith.constant 0 : index
    %c0_1 = arith.constant 0 : index
    %0 = vector.load %arg2[%c0, %c0_0, %c0_1] : memref<1x3x256xf32, #tpu.memory_space<vmem>>, vector<1x3x256xf32>
    %1 = vector.shape_cast %0 : vector<1x3x256xf32> to vector<3x256xf32>
    %2 = arith.truncf %1 : vector<3x256xf32> to vector<3x256xbf16>
    %c0_2 = arith.constant 0 : index
    %c0_3 = arith.constant 0 : index
    %3 = vector.load %arg3[%c0_2, %c0_3] : memref<32x3xbf16, #tpu.memory_space<vmem>>, vector<32x3xbf16>
    %cst = arith.constant dense<0.000000e+00> : vector<32x256xf32>
    %4 = tpu.matmul %3, %2, %cst {dimension_numbers = #tpu.dot_dimension_numbers<[1], [0], [0], [1], [0, 0, 1, 1], [], []>} : vector<32x3xbf16>, vector<3x256xbf16>, vector<32x256xf32> -> vector<32x256xf32>
    %c0_4 = arith.constant 0 : index
    %c0_5 = arith.constant 0 : index
    %5 = vector.load %arg4[%c0_4, %c0_5] : memref<32x1xf32, #tpu.memory_space<vmem>>, vector<32x1xf32>
    %6 = vector.broadcast %5 : vector<32x1xf32> to vector<32x256xf32>
    %7 = arith.addf %4, %6 : vector<32x256xf32>
    %cst_6 = arith.constant 0.000000e+00 : f32
    %8 = vector.broadcast %cst_6 : f32 to vector<32x256xf32>
    %9 = arith.maximumf %7, %8 : vector<32x256xf32>
    %c0_7 = arith.constant 0 : index
    %c0_8 = arith.constant 0 : index
    %10 = vector.load %arg5[%c0_7, %c0_8] : memref<4x32xbf16, #tpu.memory_space<vmem>>, vector<4x32xbf16>
    %11 = arith.truncf %9 : vector<32x256xf32> to vector<32x256xbf16>
    %cst_9 = arith.constant dense<0.000000e+00> : vector<4x256xf32>
    %12 = tpu.matmul %10, %11, %cst_9 {dimension_numbers = #tpu.dot_dimension_numbers<[1], [0], [0], [1], [0, 0, 1, 1], [], []>} : vector<4x32xbf16>, vector<32x256xbf16>, vector<4x256xf32> -> vector<4x256xf32>
    %c0_10 = arith.constant 0 : index
    %c0_11 = arith.constant 0 : index
    %13 = vector.load %arg6[%c0_10, %c0_11] : memref<4x1xf32, #tpu.memory_space<vmem>>, vector<4x1xf32>
    %14 = vector.broadcast %13 : vector<4x1xf32> to vector<4x256xf32>
    %15 = arith.addf %12, %14 : vector<4x256xf32>
    %c0_12 = arith.constant 0 : index
    %c0_13 = arith.constant 0 : index
    %c0_14 = arith.constant 0 : index
    %16 = vector.load %arg7[%c0_12, %c0_13, %c0_14] : memref<1x4x256xf32, #tpu.memory_space<vmem>>, vector<1x4x256xf32>
    %17 = vector.shape_cast %16 : vector<1x4x256xf32> to vector<4x256xf32>
    %18 = vector.shape_cast %15 : vector<4x256xf32> to vector<1x4x256xf32>
    tpu.vector_store %arg7[%c0_12, %c0_13, %c0_14], %18 {strides = array<i32>} : memref<1x4x256xf32, #tpu.memory_space<vmem>>, vector<1x4x256xf32>,
    return
  }
  func.func @transform_0(%arg0: i32, %arg1: i32) -> (i32, i32, i32) {
    %c0_i32 = arith.constant 0 : i32
    %c0_i32_0 = arith.constant 0 : i32
    return %arg0, %c0_i32, %arg1 : i32, i32, i32
  }
  func.func @transform_1(%arg0: i32, %arg1: i32) -> (i32, i32) {
    %c0_i32 = arith.constant 0 : i32
    %c0_i32_0 = arith.constant 0 : i32
    %c0_i32_1 = arith.constant 0 : i32
    return %c0_i32, %c0_i32_0 : i32, i32
  }
  func.func @transform_2(%arg0: i32, %arg1: i32) -> (i32, i32) {
    %c0_i32 = arith.constant 0 : i32
    %c0_i32_0 = arith.constant 0 : i32
    %c0_i32_1 = arith.constant 0 : i32
    return %c0_i32, %c0_i32_0 : i32, i32
  }
  func.func @transform_3(%arg0: i32, %arg1: i32) -> (i32, i32) {
    %c0_i32 = arith.constant 0 : i32
    %c0_i32_0 = arith.constant 0 : i32
    %c0_i32_1 = arith.constant 0 : i32
    return %c0_i32, %c0_i32_0 : i32, i32
  }
  func.func @transform_4(%arg0: i32, %arg1: i32) -> (i32, i32) {
    %c0_i32 = arith.constant 0 : i32
    %c0_i32_0 = arith.constant 0 : i32
    %c0_i32_1 = arith.constant 0 : i32
    return %c0_i32, %c0_i32_0 : i32, i32
  }
  func.func @transform_5(%arg0: i32, %arg1: i32) -> (i32, i32, i32) {
    %c0_i32 = arith.constant 0 : i32
    %c0_i32_0 = arith.constant 0 : i32
    return %arg0, %c0_i32, %arg1 : i32, i32, i32
  }
}

</mosaic_0001>

<bundles_post_ra>
// kernel: tpu_custom_call.1
= control target key start
LH: loop header
LB: loop body
LE: loop exit
PB: predicated region body
PF: predicated region fallthrough
CT: control target
= control target key end

     0   :  { %10 = vsyncpa [#allocation3], 0  ;;  %s862_s0 = inlined_call_operand.vmem [shape: f32[2,3,256], index: 0, kind: input, shape index: {}]   ;;  %s863_s1 = inlined_call_operand.vmem [shape: bf16[32,3], index: 1, kind: input, shape index: {}]   ;;  %s864_s2 = inlined_call_operand.vmem [shape: f32[32,1], index: 2, kind: input, shape index: {}]   ;;  %s865_s3 = inlined_call_operand.vmem [shape: bf16[4,32], index: 3, kind: input, shape index: {}]   ;;  %s866_s4 = inlined_call_operand.vmem [shape: f32[4,1], index: 4, kind: input, shape index: {}]   ;;  %s867_s5 = inlined_call_operand.hbm [shape: f32[2,4,256], index: 5, kind: output, shape index: {}]  }
   0x1   :  { %12 = vsyncpa [#allocation3 + $0x1], 0  ;;  %s726_s18 = smov 0   ;;  %s728_s19 = smov 0  }
   0x2   :  { %s730_s20 = smov 0   ;;  %s732_s21 = smov 0  }
   0x3   :  { %s734_s22 = smov 0   ;;  %s736_s23 = smov 0  }
   0x4 LB: > { %s531_s24 = sadd.s32 4294967295, %s691_s23   ;;  %s532_s25 = sadd.s32 4294967294, %s691_s23   ;;  %s691_s23 = sphi %s736_s23, %s18_s23   ;;  %s687_s22 = sphi %s734_s22, %s874_s22   ;;  %s683_s21 = sphi %s732_s21, %s873_s21   ;;  %s679_s20 = sphi %s730_s20, %s872_s20   ;;  %s675_s19 = sphi %s728_s19, %s871_s19   ;;  %s671_s18 = sphi %s726_s18, %s870_s18  }
   0x5   : > { %s30_s26 = sadd.s32 1, %s687_s22  ;;  %s151_s27 = sadd.s32 1, %s679_s20 }
   0x6   : > { %p32_p0 = scmp.ge.s32.totalorder %s30_s26, 2  ;;  %p161_p1 = scmp.ne.s32.totalorder %s679_s20, %s675_s19 }
   0x7   : > { %p162_p2 = scmp.eq.s32.totalorder %s531_s24, 1  ;;  %p167_p3 = scmp.ne.s32.totalorder %s675_s19, %s671_s18 }
   0x8   : > { %s876_s26 = smov (%p32_p0, %s30_s26), 0  ;;  %p168_p5 = scmp.eq.s32.totalorder %s532_s25, 1 }
   0x9   : > { %p766_p4 = por %p162_p2, %p161_p1  ;;  %s146_s29 = ssub.s32 %s687_s22, %s876_s26 }
   0xa   : > { %p535_p6 = scmp.ge.s32.totalorder %s691_s23, 1  ;;  %p149_p7 = scmp.eq.s32.totalorder %s146_s29, 0 }
   0xb   : > { %p773_p8 = por %p168_p5, %p167_p3  ;;  %p211_p9 = scmp.lt.s32.totalorder %s691_s23, 3 }
   0xc   : > { %s779_s6 = scalar_select %p149_p7, %s679_s20, %s151_s27  }
   0xd   : > { %p212_p10 = pnand %p535_p6, %p211_p9 }
   0xe   : > { %p244_p11 = scmp.lt.s32.totalorder (!%p212_p10), %s683_s21, 1  ;;  %vm306_vm0 = vcmask (!%p212_p10), 1040384   ;;  %v693_v0 = vmov (!%p212_p10), 0   ;;  %v265_v1 = vld [vmem:[%s864_s2] sm:$0xff] (!%p212_p10)  ;;  %vm307_vm1 = vcmask (!%p212_p10), 1041408   ;;  %v694_v2 = vmov (!%p212_p10), 65535  }
   0xf   : > { %215 = sbr.rel (%p212_p10) target bundleno = 501 (0x1f5), region = 40  ;;  %348 = vmatprep.mubr.bf16.mxu0 (!%p212_p10), %v693_v0  ;;  %608 = vset.pattern.permute.xlu0 (!%p212_p10), %v693_v0  ;;  %v308_v3 = vsel (!%p212_p10), %vm306_vm0, 4294967295, %v694_v2  ;;  %v267_v4 = vld [vmem:[%s864_s2 + $0x10] sm:$0xff] (!%p212_p10)  ;;  %v266_v5 = vld [vmem:[%s864_s2 + $0x8] sm:$0xff] (!%p212_p10)  ;;  %v268_v7 = vld [vmem:[%s864_s2 + $0x18] sm:$0xff] (!%p212_p10)  ;;  %vm299_vm2 = vcmask (!%p212_p10), 23552  }
  0x10   : > { %609 = vset.pattern.permute.xlu1 (!%p212_p10), %v693_v0  ;;  %424 = vmatprep.mubr.bf16.mxu1 (!%p212_p10), %v693_v0  ;;  %v309_v9 = vsel (!%p212_p10), %vm307_vm1, %v308_v3, 0  ;;  %v382_v12 = vld [vmem:[%s866_s4] sm:$0xf] (!%p212_p10)  ;;  %v612_v16 = vld [vmem:[%s863_s1 + $0x8] sm:$0xff] (!%p212_p10)   ;;  %vm388_vm3 = vcmask (!%p212_p10), 261120   ;;  %s240_s13 = sand.u32 (!%p212_p10), 1, %s675_s19  }
  0x11   : > { %271 = vperm.xlu0 (!%p212_p10), %608, %v265_v1   ;;  %281 = vperm.xlu1 (!%p212_p10), %609, %v267_v4   ;;  %v611_v15 = vld [vmem:[%s863_s1] sm:$0xff] (!%p212_p10)   ;;  %s536_s14 = sshll.u32 (!%p212_p10), %s240_s13, 3  ;;  %s439_s29 = scalar_lea.sflag (!%p212_p10), [#allocation3], %s240_s13 }
  0x12   : > { %v377_v49 = vld [vmem:[%s865_s3] sm:$0x3] (!%p212_p10)  ;;  %s242_s16 = scalar_lea.vmem (!%p212_p10), [#allocation2], %s536_s14 }
  0x13   : > { %s455_s17 = sshll.u32 (!%p212_p10), %s242_s16, 4  ;;  %s817_s17 = int_to_ptr.vmem [resolvable:$true] %s455_s17 }
  0x15   : > { %276 = vperm.xlu0 (!%p212_p10), %608, %v266_v5   ;;  %286 = vperm.xlu1 (!%p212_p10), %609, %v268_v7  }
  0x16   : > { %s245_s7 = scalar_select %p244_p11, %s683_s21, 1 }
  0x18   : > { %s549_s10 = sshll.u32 %s245_s7, 3  ;;  %s613_s7 = scalar_lea.vmem %s817_s17, 128 }
  0x19   : > { %s251_s15 = scalar_lea.vmem %s862_s0, %s549_s10  ;;  %385 = vperm.xlu0 %608, %v382_v12   ;;  %p614_p12 = scmp.ne.s32.totalorder %s817_s17, %s613_s7 }
  0x1a   : > { %v255_v6 = vld [vmem:[%s251_s15] sm:$0x77]  ;;  %s550_s15 = sshll.u32 %s683_s21, 7  ;;  %s695_s21 = smov [#allocation2]  }
  0x1b   : > { %v257_v8 = vcombine.high %v255_v6, %v255_v6  ;;  %v259_v10 = vpack.c.bf16 %v255_v6, %v255_v6  ;;  %s815_s27 = scalar_lea.hbm %s867_s5, %s550_s15  ;;  %p615_p13 = pnand %p614_p12, %p766_p4 }
  0x1c   : > { %s617_s8 = sshll.u32 %s695_s21, 4  ;;  %s618_s8 = int_to_ptr.vmem [resolvable:$false] %s617_s8 }
  0x1d   : > { %v260_v11 = vpack.c.bf16 %v257_v8, %v257_v8  ;;  %v311_v13 = vand.u32 %v309_v9, %v259_v10  ;;  %p616_p0 = pneg %p615_p13  ;;  %s619_s9 = scalar_lea.vmem %s618_s8, 256 }
  0x1e   : > { %p620_p1 = scmp.lt.s32.totalorder %s817_s17, %s618_s8  ;;  %p621_p2 = scmp.lt.s32.totalorder %s619_s9, %s613_s7 }
  0x1f   : > { %v314_v14 = vand.u32 %v309_v9, %v260_v11 }
  0x20   : > { %p622_p3 = por %p621_p2, %p620_p1 }
  0x21   : > { %316 = vmatprep.subr.bf16.mxu0 %v314_v14 }
  0x22   : > { %317 = vmatpush1.bf16.msra.mxu0 %v311_v13  ;;  %p623_p5 = pnand %p622_p3, %p616_p0 }
  0x25   : > { %541 = vmatmul.mubr.msk.bf16.vlgmr.msra.gmra.mrb[0].mxu0 %vm299_vm2, %v611_v15 }
  0x26   : > { %358 = vmatprep.mubr.bf16.mxu0 %v693_v0 }
  0x2d   : > { %542 = vmatmul.mubr.msk.bf16.gmra.mrb[4].mxu0 %vm299_vm2, %v612_v16 }
  0x90   : > { %v272_v17 = vpop.permute.xlu0 %271  ;;  %v282_v26 = vpop.permute.xlu1 %281 }
  0x94   : > { %v277_v21 = vpop.permute.xlu0 %276  ;;  %v287_v37 = vpop.permute.xlu1 %286 }
  0x98   : > { %v386_v50 = vpop.permute.xlu0 %385 }
  0xf8   : > { %v350_v18 = vpop.f32.mrb[0].mxu0 }
  0xf9   : > { %v351_v19 = vadd.f32 %v350_v18, %v272_v17  ;;  %v352_v20 = vpop.f32.mrb[1].mxu0 }
  0xfa   : > { %v353_v22 = vadd.f32 %v352_v20, %v272_v17  ;;  %v354_v23 = vpop.f32.mrb[2].mxu0 }
  0xfb   : > { %v355_v24 = vadd.f32 %v354_v23, %v277_v21  ;;  %v356_v25 = vpop.f32.mrb[3].mxu0  ;;  %v369_v28 = vmax.f32 %v351_v19, 0.0 }
  0xfc   : > { %v357_v27 = vadd.f32 %v356_v25, %v277_v21  ;;  %v370_v30 = vmax.f32 %v353_v22, 0.0 }
  0xfd   : > { %v371_v29 = vmax.f32 %v355_v24, 0.0 }
  0xfe   : > { %v372_v31 = vmax.f32 %v357_v27, 0.0 }
  0xff   : > { %v378_v32 = vpack.c.bf16 %v371_v29, %v369_v28 }
 0x100   : > { %v360_v33 = vpop.f32.mrb[4].mxu0  ;;  %v379_v34 = vpack.c.bf16 %v372_v31, %v370_v30 }
 0x101   : > { %v361_v35 = vadd.f32 %v360_v33, %v282_v26  ;;  %v362_v36 = vpop.f32.mrb[5].mxu0 }
 0x102   : > { %v363_v38 = vadd.f32 %v362_v36, %v282_v26  ;;  %v364_v39 = vpop.f32.mrb[6].mxu0  ;;  %392 = vmatprep.subr.bf16.mxu1 %v379_v34 }
 0x103   : > { %v365_v40 = vadd.f32 %v364_v39, %v287_v37  ;;  %v366_v41 = vpop.f32.mrb[7].mxu0  ;;  %393 = vmatpush1.bf16.msra.mxu1 %v378_v32  ;;  %v373_v43 = vmax.f32 %v361_v35, 0.0 }
 0x104   : > { %v367_v42 = vadd.f32 %v366_v41, %v287_v37  ;;  %v374_v45 = vmax.f32 %v363_v38, 0.0 }
 0x105   : > { %v375_v44 = vmax.f32 %v365_v40, 0.0 }
 0x106   : > { %v376_v46 = vmax.f32 %v367_v42, 0.0 }
 0x107   : > { %v380_v47 = vpack.c.bf16 %v375_v44, %v373_v43 }
 0x108   : > { %v381_v48 = vpack.c.bf16 %v376_v46, %v374_v45 }
 0x10a   : > { %394 = vmatprep.subr.bf16.mxu1 %v381_v48 }
 0x10b   : > { %395 = vmatpush1.bf16.msra.mxu1 %v380_v47 }
 0x10e   : > { %543 = vmatmul.mubr.msk.bf16.vlgmr.msra.gmra.mrb[0].mxu1 %vm388_vm3, %v377_v49 }
 0x1e1   : > { %v426_v51 = vpop.f32.mrb[0].mxu1 }
 0x1e2   : > { %v427_v52 = vadd.f32 %v426_v51, %v386_v50  ;;  %v428_v53 = vpop.f32.mrb[1].mxu1 }
 0x1e3   : > { %v429_v54 = vadd.f32 %v428_v53, %v386_v50  ;;  %v430_v55 = vpop.f32.mrb[2].mxu1 }
 0x1e4   : > { %v431_v56 = vpop.f32.mrb[3].mxu1 }
 0x1e5   : > { %v435_v57 = vcombine.low %v427_v52, %v429_v54 }
 0x1e7   : > { %437 = vst [vmem:[%s242_s16] sm:$0xff] %v435_v57 }
 0x1e8   : > { %626 = shalt.err (!%p623_p5)
}
 0x1e9   : > { %s627_s10 = scalar_lea.hbm %s815_s27, 128  ;;  %s631_s13 = scalar_lea.hbm %s867_s5, 256 }
 0x1ea   : > { %p628_p6 = scmp.ne.s32.totalorder %s815_s27, %s627_s10  ;;  %p632_p10 = scmp.lt.u32.totalorder %s815_s27, %s867_s5 }
 0x1eb   : > { %p633_p11 = scmp.lt.u32.totalorder %s631_s13, %s627_s10  ;;  %p635_p13 = scmp.lt.u32.totalorder %s627_s10, %s815_s27 }
 0x1ec   : > { %p629_p7 = pnand %p628_p6, %p766_p4 }
 0x1ed   : > { %p634_p12 = por %p633_p11, %p632_p10 }
 0x1ee   : > { %p630_p9 = pneg %p629_p7 }
 0x1ef   : > { %p636_p0 = por %p635_p13, %p634_p12 }
 0x1f1   : > { %p637_p1 = pnand %p636_p0, %p630_p9 }
 0x1f3   : > { %640 = shalt.err (!%p637_p1)
}
 0x1f4   : > { %551 = dma.vmem_to_hbm [thread:$0]  (%p766_p4), %s817_s17, 128, %s815_s27, %s439_s29  }
 0x1f5 PF: > { %p557_p2 = scmp.ge.s32.totalorder %s691_s23, 2  ;;  %s467_s16 = sand.u32 1, %s671_s18  }
 0x1f6   : > { %s468_s24 = scalar_lea.sflag [#allocation3], %s467_s16 }
 0x1f7   : > { %p554_p3 = pnand %p557_p2, %p773_p8 }
 0x1f9   : > { %666 = dma.done.wait (!%p554_p3), %s468_s24, 128  }
 0x1fa   : > { %668 = vsyncadd (!%p554_p3), %s468_s24, 4294967168  ;;  %s18_s23 = sadd.s32 1, %s691_s23   ;;  %s870_s18 = smov %s675_s19 }
 0x1fb   : > { %p15_p5 = scmp.ge.s32.totalorder %s18_s23, 4   ;;  %s871_s19 = smov %s679_s20 }
 0x1fc   : > { %s872_s20 = smov %s779_s6  ;;  %s873_s21 = smov %s687_s22 }
 0x1fd   : > { %s874_s22 = smov %s876_s26  ;;  %17 = sbr.rel (!%p15_p5) target bundleno = 4 (0x4), region = 75 }
 0x204   :  { %473 = vsyncpa [#allocation3], 1 }
 0x205   :  { %475 = vsyncpa [#allocation3 + $0x1], 1 }

</bundles_post_ra>
